<compile_context>
chip_gen: v6e
topology: v6e:2x2x1
jax: 0.10.0
libtpu: 0.0.40
codegen_flags: <defaults>
</compile_context>

<pallas_src>
import math

import jax
import jax.numpy as jnp
from jax import lax
from jax.experimental import pallas as pl
from jax.experimental.pallas import tpu as pltpu

LANE = 128                           # vreg lane width
SUBLANE = 8                          # f32 vreg sublane rows
UNIT = SUBLANE * LANE                # 1024 elements = one f32 (8,128) vreg
MAX_BLOCK_BYTES = 4 * 1024 * 1024    # 4 MiB per input block (x2 inputs x2 buffers = 16 MiB)
MIN_SPLIT_ROWS = 512                 # don't split across megacore below this many rows/block
VMEM_LIMIT_BYTES = 40 * 1024 * 1024  # > v5e's 16 MiB default scoped limit, < v7x's 64 MiB


def _round_up(x: int, m: int) -> int:
    return ((x + m - 1) // m) * m


def _make_mcc_partial_kernel(g_full: int, g_last: int, nb: int):
    """Per-block kernel emitting per-lane partial sums S_t, S_p, S_tp.

    g_full: (8,128) row-groups in a full block.
    g_last: valid row-groups in the last (possibly ragged) block.
    nb:     number of blocks (grid size).
    """

    def accumulate(t_ref, p_ref, st_ref, sp_ref, stp_ref, n_groups: int):
        # One pass over the block: each t/p (8,128) group is loaded exactly once
        # and all three accumulators are updated together (stay in vregs).
        def body(g, carry):
            st, sp, stp = carry
            r0 = pl.multiple_of(g * SUBLANE, SUBLANE)
            t = t_ref[pl.ds(r0, SUBLANE), :].astype(jnp.float32)
            p = p_ref[pl.ds(r0, SUBLANE), :].astype(jnp.float32)
            return st + t, sp + p, stp + t * p

        zero = jnp.zeros((SUBLANE, LANE), jnp.float32)
        st, sp, stp = lax.fori_loop(0, n_groups, body, (zero, zero, zero),
                                    unroll=min(8, n_groups))
        st_ref[...] = st[None]
        sp_ref[...] = sp[None]
        stp_ref[...] = stp[None]

    def kernel(t_ref, p_ref, st_ref, sp_ref, stp_ref):
        if g_last == g_full:
            accumulate(t_ref, p_ref, st_ref, sp_ref, stp_ref, g_full)
        else:
            i = pl.program_id(0)

            @pl.when(i == nb - 1)  # ragged last block: only read the valid groups
            def _():
                accumulate(t_ref, p_ref, st_ref, sp_ref, stp_ref, g_last)

            @pl.when(i != nb - 1)
            def _():
                accumulate(t_ref, p_ref, st_ref, sp_ref, stp_ref, g_full)

    return kernel


def mcc_loss(y_true: jax.Array, y_preds: jax.Array, eps: float = 1e-7) -> jax.Array:
    """Soft MCC loss over all elements of y_true / y_preds (same shape)."""
    assert y_true.shape == y_preds.shape, "y_true and y_preds must have the same shape"
    n_valid = math.prod(y_true.shape)
    assert n_valid > 0, "empty input"

    # ---- layout: lane-dense (rows, 128) slab; zero-copy when n_valid % 1024 == 0 ----
    n_slab = _round_up(n_valid, UNIT)
    n_pad = n_slab - n_valid
    rows = n_slab // LANE                      # always a multiple of 8

    # ---- tiling: big blocks, >=2 blocks when large enough (v7x megacore) ----
    itemsize_t = jnp.dtype(y_true.dtype).itemsize
    itemsize_p = jnp.dtype(y_preds.dtype).itemsize
    max_itemsize = max(itemsize_t, itemsize_p)
    min_itemsize = min(itemsize_t, itemsize_p)
    row_align = SUBLANE * max(1, 4 // min_itemsize)      # 8 f32, 16 bf16, 32 int8
    cap_rows = max(row_align,
                   (MAX_BLOCK_BYTES // (LANE * max_itemsize)) // row_align * row_align)
    if rows > cap_rows:
        tile_r = cap_rows
    elif rows >= 2 * MIN_SPLIT_ROWS:
        tile_r = _round_up((rows + 1) // 2, row_align)   # two blocks -> both v7x TCs
    else:
        tile_r = rows                                    # single full-array block
    nb = -(-rows // tile_r)
    g_full = tile_r // SUBLANE
    g_last = (rows - (nb - 1) * tile_r) // SUBLANE

    def to_slab(x):
        flat = jnp.reshape(x, (-1,))                     # bitcast-only reshape
        if n_pad:
            # TODO(synk): only reached when n_valid % 1024 != 0; this pad (<1024
            # zeros) forces one HBM copy. Aligned sizes take the zero-copy path.
            flat = jnp.pad(flat, (0, n_pad))
        return jnp.reshape(flat, (rows, LANE))

    t_slab = to_slab(y_true)
    p_slab = to_slab(y_preds)

    part_shape = jax.ShapeDtypeStruct((nb, SUBLANE, LANE), jnp.float32)
    in_bytes = rows * LANE * (itemsize_t + itemsize_p)
    out_bytes = 3 * nb * SUBLANE * LANE * 4
    cost = pl.CostEstimate(flops=4 * rows * LANE, transcendentals=0,
                           bytes_accessed=in_bytes + out_bytes)

    st, sp, stp = pl.pallas_call(
        _make_mcc_partial_kernel(g_full, g_last, nb),
        out_shape=(part_shape, part_shape, part_shape),
        grid_spec=pltpu.PrefetchScalarGridSpec(
            num_scalar_prefetch=0,
            grid=(nb,),
            in_specs=[
                pl.BlockSpec((tile_r, LANE), lambda i: (i, 0)),
                pl.BlockSpec((tile_r, LANE), lambda i: (i, 0)),
            ],
            out_specs=[
                pl.BlockSpec((1, SUBLANE, LANE), lambda i: (i, 0, 0)),
                pl.BlockSpec((1, SUBLANE, LANE), lambda i: (i, 0, 0)),
                pl.BlockSpec((1, SUBLANE, LANE), lambda i: (i, 0, 0)),
            ],
        ),
        compiler_params=pltpu.CompilerParams(
            dimension_semantics=("parallel",),           # blocks are independent
            vmem_limit_bytes=VMEM_LIMIT_BYTES,
        ),
        cost_estimate=cost,
    )(t_slab, p_slab)

    # ---- finalize (tiny): cross-block/lane reduce + MCC scalar math ----
    s_t = jnp.sum(st)
    s_p = jnp.sum(sp)
    s_tp = jnp.sum(stp)
    n = jnp.float32(n_valid)                             # zero pad contributes nothing
    tp = s_tp
    fp = s_p - s_tp
    fn = s_t - s_tp
    tn = n - s_t - s_p + s_tp
    num = tp * tn - fp * fn
    den = jnp.sqrt((tp + fp) * (tp + fn) * (tn + fp) * (tn + fn)) + jnp.float32(eps)
    return 1.0 - num / den


def _reference_mcc_loss(y_true, y_preds, eps=1e-7):
    t = y_true.astype(jnp.float32).reshape(-1)
    p = y_preds.astype(jnp.float32).reshape(-1)
    tp = jnp.sum(t * p)
    fp = jnp.sum((1.0 - t) * p)
    fn = jnp.sum(t * (1.0 - p))
    tn = jnp.sum((1.0 - t) * (1.0 - p))
    num = tp * tn - fp * fn
    den = jnp.sqrt((tp + fp) * (tp + fn) * (tn + fp) * (tn + fn)) + eps
    return 1.0 - num / den


if __name__ == "__main__":
    key = jax.random.PRNGKey(0)
    ks = jax.random.split(key, 8)

    # 1) Small NCHW input [B=2, C=4, H=16, W=16] -> single block, zero-copy slab.
    shape = (2, 4, 16, 16)
    y_true = (jax.random.uniform(ks[0], shape) > 0.5).astype(jnp.float32)
    y_preds = jax.random.uniform(ks[1], shape, dtype=jnp.float32)
    loss = jax.block_until_ready(mcc_loss(y_true, y_preds))
    ref = _reference_mcc_loss(y_true, y_preds)
    assert jnp.allclose(loss, ref, atol=1e-5, rtol=1e-5), (loss, ref)

    # 2) Larger input -> two equal blocks on the "parallel" grid axis, zero-copy.
    shape2 = (2, 3, 256, 256)
    y_true2 = (jax.random.uniform(ks[2], shape2) > 0.5).astype(jnp.float32)
    y_preds2 = jax.random.uniform(ks[3], shape2, dtype=jnp.float32)
    loss2 = jax.block_until_ready(mcc_loss(y_true2, y_preds2))
    ref2 = _reference_mcc_loss(y_true2, y_preds2)
    assert jnp.allclose(loss2, ref2, atol=1e-4, rtol=1e-4), (loss2, ref2)

    # 3) Ragged last block (rows=1048 -> blocks of 528 and 520 rows), zero-copy.
    shape3 = (2, 1, 262, 256)
    y_true3 = (jax.random.uniform(ks[4], shape3) > 0.5).astype(jnp.float32)
    y_preds3 = jax.random.uniform(ks[5], shape3, dtype=jnp.float32)
    loss3 = jax.block_until_ready(mcc_loss(y_true3, y_preds3))
    ref3 = _reference_mcc_loss(y_true3, y_preds3)
    assert jnp.allclose(loss3, ref3, atol=1e-4, rtol=1e-4), (loss3, ref3)

    # 4) Element count not a multiple of 1024 (minimal-pad path) + bf16 predictions.
    shape4 = (2, 3, 33, 33)
    y_true4 = (jax.random.uniform(ks[6], shape4) > 0.5).astype(jnp.float32)
    y_preds4 = jax.random.uniform(ks[7], shape4, dtype=jnp.float32).astype(jnp.bfloat16)
    loss4 = jax.block_until_ready(mcc_loss(y_true4, y_preds4))
    ref4 = _reference_mcc_loss(y_true4, y_preds4)
    assert jnp.allclose(loss4, ref4, atol=1e-3, rtol=1e-3), (loss4, ref4)

    print("KERNEL_OK")
</pallas_src>

<mosaic_0001>
module attributes {stable_mosaic.version = 11 : i64} {
  func.func @kernel(%arg0: i32, %arg1: memref<16x128xf32, #tpu.memory_space<vmem>>, %arg2: memref<16x128xf32, #tpu.memory_space<vmem>>, %arg3: memref<1x8x128xf32, #tpu.memory_space<vmem>>, %arg4: memref<1x8x128xf32, #tpu.memory_space<vmem>>, %arg5: memref<1x8x128xf32, #tpu.memory_space<vmem>>) attributes {dimension_semantics = [#tpu.dimension_semantics<parallel>], iteration_bounds = array<i64: 1>, scalar_prefetch = 0 : i64, scratch_operands = 0 : i64, tpu.core_type = #tpu.core_type<tc>, window_params = [{transform_indices = @transform_0, window_bounds = array<i64: 16, 128>}, {transform_indices = @transform_1, window_bounds = array<i64: 16, 128>}, {transform_indices = @transform_2, window_bounds = array<i64: 1, 8, 128>}, {transform_indices = @transform_3, window_bounds = array<i64: 1, 8, 128>}, {transform_indices = @transform_4, window_bounds = array<i64: 1, 8, 128>}]} {
    %cst = arith.constant 0.000000e+00 : f32
    %0 = vector.broadcast %cst : f32 to vector<8x128xf32>
    %c0_i32 = arith.constant 0 : i32
    %c8_i32 = arith.constant 8 : i32
    %1 = arith.muli %c0_i32, %c8_i32 : i32
    %2 = tpu.assume_multiple %1, 8 : i32
    %3 = arith.index_cast %2 : i32 to index
    %c0 = arith.constant 0 : index
    %4 = vector.load %arg1[%3, %c0] : memref<16x128xf32, #tpu.memory_space<vmem>>, vector<8x128xf32>
    %5 = arith.index_cast %2 : i32 to index
    %c0_0 = arith.constant 0 : index
    %6 = vector.load %arg2[%5, %c0_0] : memref<16x128xf32, #tpu.memory_space<vmem>>, vector<8x128xf32>
    %7 = arith.addf %0, %4 : vector<8x128xf32>
    %8 = arith.addf %0, %6 : vector<8x128xf32>
    %9 = arith.mulf %4, %6 : vector<8x128xf32>
    %10 = arith.addf %0, %9 : vector<8x128xf32>
    %c1_i32 = arith.constant 1 : i32
    %c8_i32_1 = arith.constant 8 : i32
    %11 = arith.muli %c1_i32, %c8_i32_1 : i32
    %12 = tpu.assume_multiple %11, 8 : i32
    %13 = arith.index_cast %12 : i32 to index
    %c0_2 = arith.constant 0 : index
    %14 = vector.load %arg1[%13, %c0_2] : memref<16x128xf32, #tpu.memory_space<vmem>>, vector<8x128xf32>
    %15 = arith.index_cast %12 : i32 to index
    %c0_3 = arith.constant 0 : index
    %16 = vector.load %arg2[%15, %c0_3] : memref<16x128xf32, #tpu.memory_space<vmem>>, vector<8x128xf32>
    %17 = arith.addf %7, %14 : vector<8x128xf32>
    %18 = arith.addf %8, %16 : vector<8x128xf32>
    %19 = arith.mulf %14, %16 : vector<8x128xf32>
    %20 = arith.addf %10, %19 : vector<8x128xf32>
    %c2_i32 = arith.constant 2 : i32
    %21 = vector.shape_cast %17 : vector<8x128xf32> to vector<1x8x128xf32>
    %c0_4 = arith.constant 0 : index
    %c0_5 = arith.constant 0 : index
    %c0_6 = arith.constant 0 : index
    %22 = vector.load %arg3[%c0_4, %c0_5, %c0_6] : memref<1x8x128xf32, #tpu.memory_space<vmem>>, vector<1x8x128xf32>
    tpu.vector_store %arg3[%c0_4, %c0_5, %c0_6], %21 {strides = array<i32>} : memref<1x8x128xf32, #tpu.memory_space<vmem>>, vector<1x8x128xf32>,
    %23 = vector.shape_cast %18 : vector<8x128xf32> to vector<1x8x128xf32>
    %c0_7 = arith.constant 0 : index
    %c0_8 = arith.constant 0 : index
    %c0_9 = arith.constant 0 : index
    %24 = vector.load %arg4[%c0_7, %c0_8, %c0_9] : memref<1x8x128xf32, #tpu.memory_space<vmem>>, vector<1x8x128xf32>
    tpu.vector_store %arg4[%c0_7, %c0_8, %c0_9], %23 {strides = array<i32>} : memref<1x8x128xf32, #tpu.memory_space<vmem>>, vector<1x8x128xf32>,
    %25 = vector.shape_cast %20 : vector<8x128xf32> to vector<1x8x128xf32>
    %c0_10 = arith.constant 0 : index
    %c0_11 = arith.constant 0 : index
    %c0_12 = arith.constant 0 : index
    %26 = vector.load %arg5[%c0_10, %c0_11, %c0_12] : memref<1x8x128xf32, #tpu.memory_space<vmem>>, vector<1x8x128xf32>
    tpu.vector_store %arg5[%c0_10, %c0_11, %c0_12], %25 {strides = array<i32>} : memref<1x8x128xf32, #tpu.memory_space<vmem>>, vector<1x8x128xf32>,
    return
  }
  func.func @transform_0(%arg0: i32) -> (i32, i32) {
    %c0_i32 = arith.constant 0 : i32
    %c0_i32_0 = arith.constant 0 : i32
    return %arg0, %c0_i32 : i32, i32
  }
  func.func @transform_1(%arg0: i32) -> (i32, i32) {
    %c0_i32 = arith.constant 0 : i32
    %c0_i32_0 = arith.constant 0 : i32
    return %arg0, %c0_i32 : i32, i32
  }
  func.func @transform_2(%arg0: i32) -> (i32, i32, i32) {
    %c0_i32 = arith.constant 0 : i32
    %c0_i32_0 = arith.constant 0 : i32
    %c0_i32_1 = arith.constant 0 : i32
    return %arg0, %c0_i32, %c0_i32_0 : i32, i32, i32
  }
  func.func @transform_3(%arg0: i32) -> (i32, i32, i32) {
    %c0_i32 = arith.constant 0 : i32
    %c0_i32_0 = arith.constant 0 : i32
    %c0_i32_1 = arith.constant 0 : i32
    return %arg0, %c0_i32, %c0_i32_0 : i32, i32, i32
  }
  func.func @transform_4(%arg0: i32) -> (i32, i32, i32) {
    %c0_i32 = arith.constant 0 : i32
    %c0_i32_0 = arith.constant 0 : i32
    %c0_i32_1 = arith.constant 0 : i32
    return %arg0, %c0_i32, %c0_i32_0 : i32, i32, i32
  }
}

</mosaic_0001>

<bundles_post_ra>
// kernel: tpu_custom_call.1
= control target key start
LH: loop header
LB: loop body
LE: loop exit
PB: predicated region body
PF: predicated region fallthrough
CT: control target
= control target key end

     0   :  { %10 = vsyncpa [#allocation3], 0  ;;  %s266_s0 = inlined_call_operand.hbm [shape: f32[16,128], index: 0, kind: input, shape index: {}]   ;;  %s267_s1 = inlined_call_operand.hbm [shape: f32[16,128], index: 1, kind: input, shape index: {}]   ;;  %s268_s2 = inlined_call_operand.hbm [shape: f32[1,8,128], index: 2, kind: output, shape index: {0}]   ;;  %s269_s3 = inlined_call_operand.hbm [shape: f32[1,8,128], index: 3, kind: output, shape index: {1}]   ;;  %s270_s4 = inlined_call_operand.hbm [shape: f32[1,8,128], index: 4, kind: output, shape index: {2}]  }
   0x1   :  { %11 = vsyncpa [#allocation6], 0 }
   0x2   :  { %12 = vsyncpa [#allocation4], 0 }
   0x3   :  { %13 = vsyncpa [#allocation9], 0  ;;  %s219_s15 = smov [#allocation2]  }
   0x4   :  { %s19_s16 = sshll.u32 %s219_s15, 4  ;;  %s20_s16 = int_to_ptr.vmem [resolvable:$true] %s19_s16 }
   0x5   :  { %s119_s17 = scalar_lea.vmem %s20_s16, 256  ;;  %p124_p1 = scmp.lt.s32.totalorder %s20_s16, %s20_s16 }
   0x6   :  { %p120_p0 = scmp.ne.s32.totalorder %s20_s16, %s119_s17  ;;  %p125_p2 = scmp.lt.s32.totalorder %s119_s17, %s119_s17 }
   0x8   :  { %p126_p3 = por %p125_p2, %p124_p1 }
   0xa   :  { %p127_p4 = pnand %p126_p3, %p120_p0 }
   0xc   :  { %130 = shalt.err (!%p127_p4)
}
   0xd   :  { %s220_s18 = smov 128   ;;  %s221_s19 = smov 8  }
   0xe   :  { %25 = dma.hbm_to_vmem [thread:$0]  %s266_s0, 256, %s20_s16, [#allocation3], %s220_s18, %s220_s18, %s221_s19  }
   0xf   :  { %s222_s22 = smov [#allocation5]  }
  0x10   :  { %s31_s23 = sshll.u32 %s222_s22, 4  ;;  %s32_s23 = int_to_ptr.vmem [resolvable:$true] %s31_s23 }
  0x11   :  { %s139_s24 = scalar_lea.vmem %s32_s23, 256  ;;  %p144_p6 = scmp.lt.s32.totalorder %s32_s23, %s32_s23 }
  0x12   :  { %p140_p5 = scmp.ne.s32.totalorder %s32_s23, %s139_s24  ;;  %p145_p7 = scmp.lt.s32.totalorder %s139_s24, %s139_s24 }
  0x14   :  { %p146_p8 = por %p145_p7, %p144_p6 }
  0x16   :  { %p147_p9 = pnand %p146_p8, %p140_p5 }
  0x18   :  { %150 = shalt.err (!%p147_p9)
}
  0x19   :  { %37 = dma.hbm_to_vmem [thread:$0]  %s267_s1, 256, %s32_s23, [#allocation6], %s220_s18, %s220_s18, %s221_s19  }
  0x1a   :  { %211 = dma.done.wait [#allocation3], 256  }
  0x1b   :  { %212 = vsyncadd [#allocation3], 4294967040 }
  0x1c   :  { %213 = dma.done.wait [#allocation6], 256  }
  0x1d   :  { %214 = vsyncadd [#allocation6], 4294967040  ;;  %s223_s27 = smov [#allocation8]   ;;  %s224_s28 = smov [#allocation7]   ;;  %v45_v0 = vld [vmem:[#allocation5] sm:$0xff]  ;;  %v53_v1 = vld [vmem:[#allocation5 + $0x8] sm:$0xff] }
  0x1e   :  { %s77_s0 = sshll.u32 %s223_s27, 4  ;;  %s67_s29 = sshll.u32 %s224_s28, 4  ;;  %v44_v2 = vld [vmem:[#allocation2] sm:$0xff]  ;;  %v55_v3 = vadd.f32 %v53_v1, %v45_v0  ;;  %v51_v4 = vld [vmem:[#allocation2 + $0x8] sm:$0xff]  ;;  %s78_s0 = int_to_ptr.vmem [resolvable:$true] %s77_s0  ;;  %s68_s29 = int_to_ptr.vmem [resolvable:$true] %s67_s29 }
  0x1f   :  { %s225_s30 = smov [#allocation10]   ;;  %v48_v5 = vmul.f32 %v45_v0, %v44_v2  ;;  %v54_v6 = vadd.f32 %v51_v4, %v44_v2  ;;  %v56_v7 = vmul.f32 %v53_v1, %v51_v4  ;;  %s151_s1 = scalar_lea.vmem %s78_s0, 128 }
  0x20   :  { %s87_s5 = sshll.u32 %s225_s30, 4  ;;  %59 = vst [vmem:[#allocation8] sm:$0xff] %v55_v3  ;;  %p152_p10 = scmp.ne.s32.totalorder %s78_s0, %s151_s1  ;;  %s88_s5 = int_to_ptr.vmem [resolvable:$true] %s87_s5 }
  0x21   :  { %58 = vst [vmem:[#allocation7] sm:$0xff] %v54_v6  ;;  %v57_v8 = vadd.f32 %v56_v7, %v48_v5  ;;  %p156_p11 = scmp.lt.s32.totalorder %s78_s0, %s78_s0  ;;  %p157_p12 = scmp.lt.s32.totalorder %s151_s1, %s151_s1 }
  0x23   :  { %p158_p13 = por %p157_p12, %p156_p11 }
  0x25   :  { %p159_p0 = pnand %p158_p13, %p152_p10 }
  0x27   :  { %162 = shalt.err (!%p159_p0)
}
  0x28   :  { %80 = dma.vmem_to_hbm [thread:$0]  %s78_s0, 128, %s269_s3, [#allocation9]  }
  0x29   :  { %s171_s8 = scalar_lea.vmem %s68_s29, 128  ;;  %p176_p2 = scmp.lt.s32.totalorder %s68_s29, %s68_s29 }
  0x2a   :  { %p172_p1 = scmp.ne.s32.totalorder %s68_s29, %s171_s8  ;;  %p177_p3 = scmp.lt.s32.totalorder %s171_s8, %s171_s8 }
  0x2c   :  { %p178_p4 = por %p177_p3, %p176_p2 }
  0x2e   :  { %p179_p5 = pnand %p178_p4, %p172_p1 }
  0x30   :  { %182 = shalt.err (!%p179_p5)
}
  0x31   :  { %70 = dma.vmem_to_hbm [thread:$0]  %s68_s29, 128, %s268_s2, [#allocation4]   ;;  %60 = vst [vmem:[#allocation10] sm:$0xff] %v57_v8 }
  0x32   :  { %s191_s11 = scalar_lea.vmem %s88_s5, 128  ;;  %p196_p7 = scmp.lt.s32.totalorder %s88_s5, %s88_s5 }
  0x33   :  { %p192_p6 = scmp.ne.s32.totalorder %s88_s5, %s191_s11  ;;  %p197_p8 = scmp.lt.s32.totalorder %s191_s11, %s191_s11 }
  0x35   :  { %p198_p9 = por %p197_p8, %p196_p7 }
  0x37   :  { %p199_p10 = pnand %p198_p9, %p192_p6 }
  0x39   :  { %202 = shalt.err (!%p199_p10)
}
  0x3a   :  { %90 = dma.vmem_to_hbm [thread:$0]  %s88_s5, 128, %s270_s4, [#allocation9]  }
  0x3b   :  { %215 = dma.done.wait [#allocation4], 128  }
  0x3c   :  { %216 = vsyncadd [#allocation4], 4294967168 }
  0x3d   :  { %217 = dma.done.wait [#allocation9], 256  }
  0x3e   :  { %218 = vsyncadd [#allocation9], 4294967040 }
  0x3f   :  { %100 = vsyncpa [#allocation3], 1 }
  0x40   :  { %101 = vsyncpa [#allocation6], 1 }
  0x41   :  { %102 = vsyncpa [#allocation4], 1 }
  0x42   :  { %103 = vsyncpa [#allocation9], 1 }

</bundles_post_ra>
